<compile_context>
chip_gen: v5e
topology: v5e:2x2
jax: 0.10.0
libtpu: 0.0.40
codegen_flags: <defaults>
</compile_context>

<pallas_src>
import jax
import jax.numpy as jnp
from jax.experimental import pallas as pl
from jax.experimental.pallas import tpu as pltpu

H_PAD = 32              # hidden padded 20 -> 32 (sublane axis, multiple of 8/16)
A_PAD = 8               # fc2 MXU M-dim pad only; softmax/output use n_actions rows
DEFAULT_TILE_B = 32768  # batch tile (multiple of 128); ~10 MiB live, fits v7x VMEM


def _round_up(x, m):
    return ((x + m - 1) // m) * m


def pgnet_kernel(x_ref, w1_ref, b1_ref, w2_ref, b2_ref, out_ref):
    """One batch tile, transposed layout (batch on the 128-lane axis).

    x_ref  : (F, TB)        bf16
    w1_ref : (H_PAD, F)     bf16
    b1_ref : (H_PAD, 1)     f32
    w2_ref : (A_PAD, H_PAD) bf16  (rows >= n_actions are zero and get sliced off)
    b2_ref : (A_PAD, 1)     f32
    out_ref: (n_actions, TB) f32
    """
    n_actions = out_ref.shape[0]
    # fc1 + ReLU (bf16 MXU inputs, f32 accumulation, f32 elementwise)
    h = jnp.dot(w1_ref[...], x_ref[...], preferred_element_type=jnp.float32)
    h = jnp.maximum(h + b1_ref[...], 0.0)
    # fc2 (keep the M=8 padded MXU tile, then drop the padded action rows)
    logits = jnp.dot(w2_ref[...], h.astype(jnp.bfloat16),
                     preferred_element_type=jnp.float32) + b2_ref[...]
    logits = logits[:n_actions]
    # numerically stable softmax over the action axis (axis 0), exact division
    m = jnp.max(logits, axis=0, keepdims=True)
    e = jnp.exp(logits - m)
    denom = jnp.sum(e, axis=0, keepdims=True)
    out_ref[...] = (e / denom).astype(out_ref.dtype)


def pgnet_forward(x, w1, b1, w2, b2, *, tile_b=DEFAULT_TILE_B):
    """x: (batch, n_features) f32; w1: (n_features, hidden); b1: (hidden,);
       w2: (hidden, n_actions); b2: (n_actions,). Returns (batch, n_actions) f32."""
    batch, n_features = x.shape
    hidden, n_actions = w2.shape
    assert hidden <= H_PAD and n_actions <= A_PAD

    # ---- pad weights/biases into transposed, tile-friendly layouts (exact) ----
    w1_t = jnp.zeros((H_PAD, n_features), jnp.bfloat16).at[:hidden, :].set(
        w1.T.astype(jnp.bfloat16))
    b1_t = jnp.zeros((H_PAD, 1), jnp.float32).at[:hidden, 0].set(
        b1.reshape(-1).astype(jnp.float32))
    w2_t = jnp.zeros((A_PAD, H_PAD), jnp.bfloat16).at[:n_actions, :hidden].set(
        w2.T.astype(jnp.bfloat16))
    b2_t = jnp.zeros((A_PAD, 1), jnp.float32).at[:n_actions, 0].set(
        b2.reshape(-1).astype(jnp.float32))

    # ---- batch tiling: batch sits on the 128-lane axis of the transposed slab ----
    if batch <= 1024:
        tb = _round_up(batch, 8)          # single tile == full (padded) array
        padded_batch = tb
    else:
        # >= 2 grid steps so both v7x TensorCores get work; tile multiple of 128
        tb = min(tile_b, _round_up(pl.cdiv(batch, 2), 128))
        padded_batch = _round_up(batch, tb)

    grid = (padded_batch // tb,)

    # single transpose+cast(+pad) pass; allowed to fuse into the input DMA below
    x_t = x.astype(jnp.bfloat16).T
    if padded_batch != batch:
        x_t = jnp.pad(x_t, ((0, 0), (0, padded_batch - batch)))

    flops = 2 * padded_batch * (n_features * H_PAD + H_PAD * A_PAD)
    bytes_accessed = (x_t.size * 2 + padded_batch * n_actions * 4
                      + w1_t.size * 2 + w2_t.size * 2 + (H_PAD + A_PAD) * 4)
    cost = pl.CostEstimate(flops=flops,
                           transcendentals=padded_batch * n_actions,
                           bytes_accessed=bytes_accessed)

    out_t = pl.pallas_call(
        pgnet_kernel,
        out_shape=jax.ShapeDtypeStruct((n_actions, padded_batch), jnp.float32),
        grid_spec=pltpu.PrefetchScalarGridSpec(
            num_scalar_prefetch=0,
            grid=grid,
            in_specs=[
                pl.BlockSpec((n_features, tb), lambda i: (0, i)),     # x streams
                pl.BlockSpec((H_PAD, n_features), lambda i: (0, 0)),  # weights resident
                pl.BlockSpec((H_PAD, 1), lambda i: (0, 0)),
                pl.BlockSpec((A_PAD, H_PAD), lambda i: (0, 0)),
                pl.BlockSpec((A_PAD, 1), lambda i: (0, 0)),
            ],
            out_specs=pl.BlockSpec((n_actions, tb), lambda i: (0, i)),
        ),
        compiler_params=pltpu.CompilerParams(
            dimension_semantics=("parallel",),          # megacore sharding on v7x
            vmem_limit_bytes=32 * 1024 * 1024,          # headroom on every generation
            allow_input_fusion=[True, False, False, False, False],
        ),
        cost_estimate=cost,
    )(x_t, w1_t, b1_t, w2_t, b2_t)

    # un-pad and return in the PyTorch (batch, n_actions) layout
    # (only an (n_actions, batch) slab — negligible transpose cost)
    return out_t[:, :batch].T


def pgnet_ref(x, w1, b1, w2, b2):
    # mirrors the kernel's bf16-input / f32-accumulate numerics
    h = jnp.dot(x.astype(jnp.bfloat16), w1.astype(jnp.bfloat16),
                preferred_element_type=jnp.float32) + b1.reshape(1, -1)
    h = jnp.maximum(h, 0.0)
    logits = jnp.dot(h.astype(jnp.bfloat16), w2.astype(jnp.bfloat16),
                     preferred_element_type=jnp.float32) + b2.reshape(1, -1)
    return jax.nn.softmax(logits, axis=1)


if __name__ == "__main__":
    # CartPole-like sizes: n_features=4, hidden=20, n_actions=2, batch=8
    batch, n_features, hidden, n_actions = 8, 4, 20, 2

    key = jax.random.PRNGKey(0)
    kx, kw1, kw2 = jax.random.split(key, 3)

    # init_weights(): normal(0, 0.1) weights, constant 0.01 biases
    x = jax.random.normal(kx, (batch, n_features), dtype=jnp.float32)
    w1 = 0.1 * jax.random.normal(kw1, (n_features, hidden), dtype=jnp.float32)
    b1 = jnp.full((hidden,), 0.01, dtype=jnp.float32)
    w2 = 0.1 * jax.random.normal(kw2, (hidden, n_actions), dtype=jnp.float32)
    b2 = jnp.full((n_actions,), 0.01, dtype=jnp.float32)

    out = pgnet_forward(x, w1, b1, w2, b2)
    out = jax.block_until_ready(out)

    ref = pgnet_ref(x, w1, b1, w2, b2)
    assert out.shape == (batch, n_actions)
    assert jnp.allclose(out, ref, atol=2e-3, rtol=2e-3), (out, ref)
    # probabilities must sum to 1 along dim=1 (exact division in-kernel)
    assert jnp.allclose(jnp.sum(out, axis=1), 1.0, atol=1e-5)

    print("KERNEL_OK")
</pallas_src>

<mosaic_0001>
module attributes {stable_mosaic.version = 11 : i64} {
  func.func @pgnet_kernel(%arg0: i32, %arg1: memref<4x8xbf16, #tpu.memory_space<vmem>>, %arg2: memref<32x4xbf16, #tpu.memory_space<vmem>>, %arg3: memref<32x1xf32, #tpu.memory_space<vmem>>, %arg4: memref<8x32xbf16, #tpu.memory_space<vmem>>, %arg5: memref<8x1xf32, #tpu.memory_space<vmem>>, %arg6: memref<2x8xf32, #tpu.memory_space<vmem>>) attributes {dimension_semantics = [#tpu.dimension_semantics<parallel>], iteration_bounds = array<i64: 1>, scalar_prefetch = 0 : i64, scratch_operands = 0 : i64, tpu.core_type = #tpu.core_type<tc>, window_params = [{transform_indices = @transform_0, window_bounds = array<i64: 4, 8>}, {pipeline_mode = #tpu.pipeline_mode<synchronous>, transform_indices = @transform_1, window_bounds = array<i64: 32, 4>}, {pipeline_mode = #tpu.pipeline_mode<synchronous>, transform_indices = @transform_2, window_bounds = array<i64: 32, 1>}, {pipeline_mode = #tpu.pipeline_mode<synchronous>, transform_indices = @transform_3, window_bounds = array<i64: 8, 32>}, {pipeline_mode = #tpu.pipeline_mode<synchronous>, transform_indices = @transform_4, window_bounds = array<i64: 8, 1>}, {transform_indices = @transform_5, window_bounds = array<i64: 2, 8>}]} {
    %c0 = arith.constant 0 : index
    %c0_0 = arith.constant 0 : index
    %0 = vector.load %arg2[%c0, %c0_0] : memref<32x4xbf16, #tpu.memory_space<vmem>>, vector<32x4xbf16>
    %c0_1 = arith.constant 0 : index
    %c0_2 = arith.constant 0 : index
    %1 = vector.load %arg1[%c0_1, %c0_2] : memref<4x8xbf16, #tpu.memory_space<vmem>>, vector<4x8xbf16>
    %cst = arith.constant dense<0.000000e+00> : vector<32x8xf32>
    %2 = tpu.matmul %0, %1, %cst {dimension_numbers = #tpu.dot_dimension_numbers<[1], [0], [0], [1], [0, 0, 1, 1], [], []>} : vector<32x4xbf16>, vector<4x8xbf16>, vector<32x8xf32> -> vector<32x8xf32>
    %c0_3 = arith.constant 0 : index
    %c0_4 = arith.constant 0 : index
    %3 = vector.load %arg3[%c0_3, %c0_4] : memref<32x1xf32, #tpu.memory_space<vmem>>, vector<32x1xf32>
    %4 = vector.broadcast %3 : vector<32x1xf32> to vector<32x8xf32>
    %5 = arith.addf %2, %4 : vector<32x8xf32>
    %cst_5 = arith.constant 0.000000e+00 : f32
    %6 = vector.broadcast %cst_5 : f32 to vector<32x8xf32>
    %7 = arith.maximumf %5, %6 : vector<32x8xf32>
    %c0_6 = arith.constant 0 : index
    %c0_7 = arith.constant 0 : index
    %8 = vector.load %arg4[%c0_6, %c0_7] : memref<8x32xbf16, #tpu.memory_space<vmem>>, vector<8x32xbf16>
    %9 = arith.truncf %7 : vector<32x8xf32> to vector<32x8xbf16>
    %cst_8 = arith.constant dense<0.000000e+00> : vector<8x8xf32>
    %10 = tpu.matmul %8, %9, %cst_8 {dimension_numbers = #tpu.dot_dimension_numbers<[1], [0], [0], [1], [0, 0, 1, 1], [], []>} : vector<8x32xbf16>, vector<32x8xbf16>, vector<8x8xf32> -> vector<8x8xf32>
    %c0_9 = arith.constant 0 : index
    %c0_10 = arith.constant 0 : index
    %11 = vector.load %arg5[%c0_9, %c0_10] : memref<8x1xf32, #tpu.memory_space<vmem>>, vector<8x1xf32>
    %12 = vector.broadcast %11 : vector<8x1xf32> to vector<8x8xf32>
    %13 = arith.addf %10, %12 : vector<8x8xf32>
    %14 = vector.extract_strided_slice %13 {offsets = [0, 0], sizes = [2, 8], strides = [1, 1]} : vector<8x8xf32> to vector<2x8xf32>
    %cst_11 = arith.constant dense<0xFF800000> : vector<8xf32>
    %15 = vector.multi_reduction <maximumf>, %14, %cst_11 [0] : vector<2x8xf32> to vector<8xf32>
    %16 = vector.shape_cast %15 : vector<8xf32> to vector<1x8xf32>
    %17 = vector.broadcast %16 : vector<1x8xf32> to vector<2x8xf32>
    %18 = arith.subf %14, %17 : vector<2x8xf32>
    %19 = math.exp %18 : vector<2x8xf32>
    %cst_12 = arith.constant dense<0.000000e+00> : vector<8xf32>
    %20 = vector.multi_reduction <add>, %19, %cst_12 [0] : vector<2x8xf32> to vector<8xf32>
    %21 = vector.shape_cast %20 : vector<8xf32> to vector<1x8xf32>
    %22 = vector.broadcast %21 : vector<1x8xf32> to vector<2x8xf32>
    %23 = arith.divf %19, %22 : vector<2x8xf32>
    %c0_13 = arith.constant 0 : index
    %c0_14 = arith.constant 0 : index
    %24 = vector.load %arg6[%c0_13, %c0_14] : memref<2x8xf32, #tpu.memory_space<vmem>>, vector<2x8xf32>
    tpu.vector_store %arg6[%c0_13, %c0_14], %23 {strides = array<i32>} : memref<2x8xf32, #tpu.memory_space<vmem>>, vector<2x8xf32>,
    return
  }
  func.func @transform_0(%arg0: i32) -> (i32, i32) {
    %c0_i32 = arith.constant 0 : i32
    %c0_i32_0 = arith.constant 0 : i32
    return %c0_i32, %arg0 : i32, i32
  }
  func.func @transform_1(%arg0: i32) -> (i32, i32) {
    %c0_i32 = arith.constant 0 : i32
    %c0_i32_0 = arith.constant 0 : i32
    %c0_i32_1 = arith.constant 0 : i32
    return %c0_i32, %c0_i32_0 : i32, i32
  }
  func.func @transform_2(%arg0: i32) -> (i32, i32) {
    %c0_i32 = arith.constant 0 : i32
    %c0_i32_0 = arith.constant 0 : i32
    %c0_i32_1 = arith.constant 0 : i32
    return %c0_i32, %c0_i32_0 : i32, i32
  }
  func.func @transform_3(%arg0: i32) -> (i32, i32) {
    %c0_i32 = arith.constant 0 : i32
    %c0_i32_0 = arith.constant 0 : i32
    %c0_i32_1 = arith.constant 0 : i32
    return %c0_i32, %c0_i32_0 : i32, i32
  }
  func.func @transform_4(%arg0: i32) -> (i32, i32) {
    %c0_i32 = arith.constant 0 : i32
    %c0_i32_0 = arith.constant 0 : i32
    %c0_i32_1 = arith.constant 0 : i32
    return %c0_i32, %c0_i32_0 : i32, i32
  }
  func.func @transform_5(%arg0: i32) -> (i32, i32) {
    %c0_i32 = arith.constant 0 : i32
    %c0_i32_0 = arith.constant 0 : i32
    return %c0_i32, %arg0 : i32, i32
  }
}

</mosaic_0001>

<bundles_post_ra>
// kernel: tpu_custom_call.1
= control target key start
LH: loop header
LB: loop body
LE: loop exit
PB: predicated region body
PF: predicated region fallthrough
CT: control target
= control target key end

     0   :  { %vm68_vm0 = vcmask 1041408   ;;  %vm61_vm1 = vcmask 31744   ;;  %s285_s0 = inlined_call_operand.vmem [shape: bf16[4,8], index: 0, kind: input, shape index: {}]   ;;  %s286_s1 = inlined_call_operand.vmem [shape: bf16[32,4], index: 1, kind: input, shape index: {}]   ;;  %s287_s2 = inlined_call_operand.vmem [shape: f32[32,1], index: 2, kind: input, shape index: {}]   ;;  %s288_s3 = inlined_call_operand.vmem [shape: bf16[8,32], index: 3, kind: input, shape index: {}]   ;;  %s289_s4 = inlined_call_operand.vmem [shape: f32[8,1], index: 4, kind: input, shape index: {}]   ;;  %s290_s5 = inlined_call_operand.hbm [shape: f32[2,8], index: 5, kind: output, shape index: {}]  }
   0x1   :  { %v26_v0 = vld [vmem:[%s285_s0] sm:$0x3]  ;;  %v183_v1 = vld [vmem:[%s286_s1 + $0x8] sm:$0xff]  ;;  %v29_v4 = vld [vmem:[%s287_s2 + $0x10] sm:$0xff] }
   0x2   :  { %v70_v2 = vsel %vm68_vm0, %v26_v0, 0  ;;  %v182_v3 = vld [vmem:[%s286_s1] sm:$0xff] }
   0x3   :  { %v27_v5 = vld [vmem:[%s287_s2] sm:$0xff]  ;;  %184 = vmatpush.bf16.msra.mxu2 %v70_v2  ;;  %79 = vmatpush.bf16.msra.mxu0 %v70_v2 }
   0x4   :  { %10 = vsyncpa [#allocation3], 0  ;;  %v220_v6 = vmov 0   ;;  %v30_v7 = vld [vmem:[%s287_s2 + $0x18] sm:$0xff]  ;;  %v28_v8 = vld [vmem:[%s287_s2 + $0x8] sm:$0xff]  ;;  %vm104_vm2 = vcmask 261120  }
   0x5   :  { %187 = vset.pattern.permute.xlu0 %v220_v6  ;;  %188 = vset.pattern.permute.xlu1 %v220_v6  ;;  %v98_v9 = vld [vmem:[%s289_s4] sm:$0xff]  ;;  %vm121_vm3 = vcmask 58368   ;;  %s162_s10 = sshll.u32 %s290_s5, 4  ;;  %s163_s10 = int_to_ptr.hbm [resolvable:$true] %s162_s10 }
   0x6   :  { %43 = vperm.xlu0 %187, %v29_v4   ;;  %33 = vperm.xlu1 %188, %v27_v5   ;;  %v95_v28 = vld [vmem:[%s288_s3] sm:$0xf]  ;;  %s221_s3 = smov [#allocation2]  }
   0x7   :  { %180 = vmatmul.msk.bf16.vlgmr.msra.gmra.mxu2 %vm61_vm1, %v183_v1  ;;  %179 = vmatmul.msk.bf16.vlgmr.msra.gmra.mxu0 %vm61_vm1, %v182_v3  ;;  %s160_s7 = sshll.u32 %s221_s3, 4  ;;  %s161_s7 = int_to_ptr.vmem [resolvable:$true] %s160_s7 }
   0x8   :  { %189 = vset.pattern.permute.xlu2 %v220_v6 }
   0x9   :  { %101 = vperm.xlu2 %189, %v98_v9  }
   0xe   :  { %48 = vperm.xlu0 %187, %v30_v7   ;;  %38 = vperm.xlu1 %188, %v28_v8  }
  0x63   :  { %v102_v29 = vpop.permute.xlu2 %101 }
  0x78   :  { %v34_v10 = vpop.permute.xlu1 %33  ;;  %v44_v12 = vpop.permute.xlu0 %43 }
  0x80   :  { %v39_v14 = vpop.permute.xlu1 %38  ;;  %v49_v17 = vpop.permute.xlu0 %48 }
  0x84   :  { %v81_v11 = vpop.f32.mrf.mxu0 }
  0x85   :  { %v82_v19 = vadd.f32 %v81_v11, %v34_v10 }
  0x87   :  { %v91_v24 = vmax.f32 %v82_v19, 0.0 }
  0x8a   :  { %v86_v13 = vpop.f32.mrf.mxu2 }
  0x8b   :  { %v87_v16 = vadd.f32 %v86_v13, %v44_v12 }
  0x8c   :  { %v83_v15 = vpop.f32.mrf.mxu0 }
  0x8d   :  { %v84_v20 = vadd.f32 %v83_v15, %v39_v14  ;;  %v93_v22 = vmax.f32 %v87_v16, 0.0 }
  0x8f   :  { %v92_v25 = vmax.f32 %v84_v20, 0.0 }
  0x91   :  { %v96_v27 = vpack.c.bf16 %v92_v25, %v91_v24 }
  0x92   :  { %v88_v18 = vpop.f32.mrf.mxu2 }
  0x93   :  { %v89_v21 = vadd.f32 %v88_v18, %v49_v17 }
  0x95   :  { %v94_v23 = vmax.f32 %v89_v21, 0.0 }
  0x97   :  { %v97_v26 = vpack.c.bf16 %v94_v23, %v93_v22 }
  0x99   :  { %114 = vmatpush.bf16.msra.mxu1 %v97_v26 }
  0x9d   :  { %115 = vmatpush.bf16.msra.mxu1 %v96_v27 }
  0xa0   :  { %181 = vmatmul.msk.bf16.vlgmr.msra.gmra.mxu1 %vm104_vm2, %v95_v28 }
 0x11d   :  { %v117_v30 = vpop.f32.mrf.mxu1 }
 0x11e   :  { %v118_v31 = vadd.f32 %v117_v30, %v102_v29 }
 0x120   :  { %v122_v32 = vsel %vm121_vm3, %v118_v31, -inf }
 0x121   :  { %v123_v33 = vrot.slane %v122_v32, 4 }
 0x123   :  { %v124_v34 = vmax.f32 %v122_v32, %v123_v33 }
 0x125   :  { %v125_v35 = vrot.slane %v124_v34, 2  ;;  %v119_v36 = vpop.f32.mrf.mxu1 }
 0x127   :  { %v126_v37 = vmax.f32 %v124_v34, %v125_v35 }
 0x129   :  { %v127_v38 = vrot.slane %v126_v37, 1 }
 0x12b   :  { %v128_v39 = vmax.f32 %v126_v37, %v127_v38 }
 0x12d   :  { %v129_v40 = vsub.f32 %v118_v31, %v128_v39 }
 0x12f   :  { %v130_v41 = vmul.f32 1.442695, %v129_v40 }
 0x131   :  { %190 = vpow2.f32 %v130_v41 }
 0x137   :  { %v191_v42 = vpop.eup %190 }
 0x138   :  { %v132_v43 = vsel %vm121_vm3, %v191_v42, 0.0 }
 0x139   :  { %v133_v44 = vrot.slane %v132_v43, 4 }
 0x13b   :  { %v134_v45 = vadd.f32 %v133_v44, %v132_v43 }
 0x13d   :  { %v135_v46 = vrot.slane %v134_v45, 2 }
 0x13f   :  { %v136_v47 = vadd.f32 %v135_v46, %v134_v45 }
 0x141   :  { %v137_v48 = vrot.slane %v136_v47, 1 }
 0x143   :  { %v138_v49 = vadd.f32 %v137_v48, %v136_v47 }
 0x145   :  { %192 = vrcp.f32 %v138_v49  ;;  %v150_v53 = vand.u32 2147483648, %v138_v49  ;;  %v148_v55 = vand.u32 2147483647, %v138_v49  ;;  %vm144_vm5 = vweird.f32 %v138_v49 }
 0x147   :  { %v151_v57 = vor.u32 1.1754944e-38, %v150_v53  ;;  %vm149_vm7 = vcmp.eq.f32.partialorder %v148_v55, 8.507059e+37 }
 0x14b   :  { %v193_v50 = vpop.eup %192 }
 0x14c   :  { %v140_v51 = vmul.f32 %v193_v50, %v138_v49  ;;  %vm145_vm4 = vweird.f32 %v193_v50 }
 0x14d   :  { %vm146_vm6 = vmor %vm144_vm5, %vm145_vm4 }
 0x14e   :  { %v141_v52 = vsub.f32 1.0, %v140_v51 }
 0x150   :  { %v142_v54 = vmul.f32 %v193_v50, %v141_v52 }
 0x152   :  { %v143_v56 = vadd.f32 %v193_v50, %v142_v54 }
 0x154   :  { %v147_v58 = vsel %vm146_vm6, %v193_v50, %v143_v56 }
 0x155   :  { %v152_v59 = vsel %vm149_vm7, %v151_v57, %v147_v58 }
 0x156   :  { %v153_v60 = vmul.f32 %v191_v42, %v152_v59 }
 0x158   :  { %154 = vst.msk [vmem:[#allocation2] sm:$0x3] %vm121_vm3, %v153_v60 }
 0x159   :  { %165 = dma.vmem_to_hbm [thread:$0]  %s161_s7, 32, %s163_s10, [#allocation3]  }
 0x15a   :  { %218 = dma.done.wait [#allocation3], 32  }
 0x15b   :  { %219 = vsyncadd [#allocation3], 4294967264 }
 0x15c   :  { %170 = vsyncpa [#allocation3], 1 }

</bundles_post_ra>
